<compile_context>
chip_gen: v5e
topology: v5e:2x2
jax: 0.10.0
libtpu: 0.0.40
codegen_flags: <defaults>
</compile_context>

<pallas_src>
import jax
import jax.numpy as jnp
from jax.experimental import pallas as pl
from jax.experimental.pallas import tpu as pltpu


# ----------------------------------------------------------------------------
# Kernel body: pure pass-through copy of one VMEM tile.
# ----------------------------------------------------------------------------
def _copy_kernel(x_ref, o_ref):
    o_ref[...] = x_ref[...]


def _cdiv(a, b):
    return -(-a // b)


def _sublane_pack(itemsize):
    # Packed sublane tile height: f32 -> 8, bf16/f16 -> 16, int8/fp8 -> 32.
    return {1: 32, 2: 16, 4: 8, 8: 8}.get(itemsize, 8)


def _device_kind():
    try:
        return jax.devices()[0].device_kind.lower()
    except Exception:  # pragma: no cover - defensive, e.g. no devices yet
        return ""


def _generation_params():
    """(target_block_bytes, vmem_limit_bytes) tuned per TPU generation."""
    kind = _device_kind()
    if "v7" in kind:
        # ~3.2 TB/s HBM: 2 MiB blocks leave the stream overhead-bound;
        # 8 MiB blocks (32 MiB live, double-buffered in+out) + raised limit.
        return 8 * 1024 * 1024, 48 << 20
    if "v6" in kind:
        # 32 MiB scoped-VMEM default: 4 MiB blocks -> 16 MiB live, free headroom.
        return 4 * 1024 * 1024, None
    # v5e (16 MiB scoped-VMEM default) and unknown chips: stay at 2 MiB blocks
    # (8 MiB live) so double-buffering never hits the scoped limit.
    return 2 * 1024 * 1024, None


_TARGET_BLOCK_BYTES, _VMEM_LIMIT_BYTES = _generation_params()
_PREFERRED_LANES = (1024, 512, 256, 128)


def _streaming_copy_2d(x2):
    """Stream a lane-dense (rows, lanes) slab HBM->VMEM->HBM via pallas_call."""
    rows, lanes = x2.shape
    itemsize = jnp.dtype(x2.dtype).itemsize
    pack = _sublane_pack(itemsize)

    bytes_per_row = lanes * itemsize
    max_block_rows = max(pack, (_TARGET_BLOCK_BYTES // bytes_per_row) // pack * pack)
    if rows <= max_block_rows:
        block_rows = rows  # full-dim block: always layout-legal, single step
    else:
        block_rows = max_block_rows  # multiple of the packed sublane tile

    grid = (_cdiv(rows, block_rows),)  # partial last block is masked by Pallas

    return pl.pallas_call(
        _copy_kernel,
        out_shape=jax.ShapeDtypeStruct((rows, lanes), x2.dtype),
        grid_spec=pltpu.PrefetchScalarGridSpec(
            num_scalar_prefetch=0,
            grid=grid,
            in_specs=[pl.BlockSpec((block_rows, lanes), lambda i: (i, 0))],
            out_specs=pl.BlockSpec((block_rows, lanes), lambda i: (i, 0)),
        ),
        # Pure-bandwidth op: 0 flops, read + write every byte once.
        cost_estimate=pl.CostEstimate(
            flops=0,
            transcendentals=0,
            bytes_accessed=2 * rows * lanes * itemsize,
        ),
        compiler_params=pltpu.CompilerParams(
            dimension_semantics=("parallel",),
            vmem_limit_bytes=_VMEM_LIMIT_BYTES,
        ),
    )(x2)


@jax.jit
def _identity_copy(x):
    """Materialized identity: copy x into a fresh buffer with a Pallas kernel."""
    orig_shape = x.shape
    total = int(x.size)
    if total == 0:
        return x  # empty-grid guard

    # --- pick a lane-dense layout that needs no pad and no tail slice ------
    lanes = None
    for cand in _PREFERRED_LANES:
        if total % cand == 0:
            lanes = cand
            break
    if lanes is None and x.ndim >= 1:
        last = orig_shape[-1]
        if last >= 128 and last % 128 == 0:
            lanes = last

    if lanes is not None:
        x2 = x.reshape(total // lanes, lanes)  # zero-copy reshape
        return _streaming_copy_2d(x2).reshape(orig_shape)

    # --- rare cold path: total not a multiple of 128 and last dim unaligned.
    # TODO(synk): the tail pad and [:total] slice each add an HBM pass; only
    # hit for lane-unfriendly sizes, acceptable for this fallback.
    lanes = 1024
    rows = _cdiv(total, lanes)
    flat = jnp.pad(x.reshape(-1), (0, rows * lanes - total))
    out2 = _streaming_copy_2d(flat.reshape(rows, lanes))
    return out2.reshape(-1)[:total].reshape(orig_shape)


class BaseTransform:
    """JAX/Pallas mirror of the PyTorch BaseTransform (abstract, no params)."""

    def __init__(self):
        # No parameters registered in the PyTorch __init__.
        pass

    def forward(self, x):
        # Abstract no-op in PyTorch. Identity => zero HBM traffic: return x.
        return jnp.asarray(x)

    def inverse(self, x):
        # Inverse of identity is identity; same zero-traffic fast path.
        return jnp.asarray(x)

    def copy(self, x):
        # Pallas-backed materialized copy for callers that need a fresh buffer.
        return _identity_copy(x)

    def __call__(self, x):
        return self.forward(x)


if __name__ == "__main__":
    key = jax.random.PRNGKey(0)
    # Small NCHW tensor consistent with an image-like transform.
    x = jax.random.normal(key, (2, 4, 16, 16), dtype=jnp.float32)

    mod = BaseTransform()

    # Identity fast path (no kernel, per perf review).
    y = jax.block_until_ready(mod(x))
    assert y.shape == x.shape and y.dtype == x.dtype
    assert bool(jnp.all(y == x))
    y_inv = jax.block_until_ready(mod.inverse(y))
    assert bool(jnp.all(y_inv == x))

    # Pallas streaming-copy kernel (materialized identity), run once.
    z = jax.block_until_ready(mod.copy(x))
    assert z.shape == x.shape and z.dtype == x.dtype
    assert bool(jnp.all(z == x))

    # Also exercise a packed-dtype path (bf16 -> 16-sublane alignment rules).
    xb = x.astype(jnp.bfloat16)
    zb = jax.block_until_ready(mod.copy(xb))
    assert zb.dtype == jnp.bfloat16 and bool(jnp.all(zb == xb))

    print("KERNEL_OK")
</pallas_src>

<mosaic_0001>
module attributes {stable_mosaic.version = 11 : i64} {
  func.func @_copy_kernel(%arg0: i32, %arg1: memref<2x1024xf32, #tpu.memory_space<vmem>>, %arg2: memref<2x1024xf32, #tpu.memory_space<vmem>>) attributes {dimension_semantics = [#tpu.dimension_semantics<parallel>], iteration_bounds = array<i64: 1>, scalar_prefetch = 0 : i64, scratch_operands = 0 : i64, tpu.core_type = #tpu.core_type<tc>, window_params = [{transform_indices = @transform_0, window_bounds = array<i64: 2, 1024>}, {transform_indices = @transform_1, window_bounds = array<i64: 2, 1024>}]} {
    %c0 = arith.constant 0 : index
    %c0_0 = arith.constant 0 : index
    %0 = vector.load %arg1[%c0, %c0_0] : memref<2x1024xf32, #tpu.memory_space<vmem>>, vector<2x1024xf32>
    %c0_1 = arith.constant 0 : index
    %c0_2 = arith.constant 0 : index
    %1 = vector.load %arg2[%c0_1, %c0_2] : memref<2x1024xf32, #tpu.memory_space<vmem>>, vector<2x1024xf32>
    tpu.vector_store %arg2[%c0_1, %c0_2], %0 {strides = array<i32>} : memref<2x1024xf32, #tpu.memory_space<vmem>>, vector<2x1024xf32>,
    return
  }
  func.func @transform_0(%arg0: i32) -> (i32, i32) {
    %c0_i32 = arith.constant 0 : i32
    %c0_i32_0 = arith.constant 0 : i32
    return %arg0, %c0_i32 : i32, i32
  }
  func.func @transform_1(%arg0: i32) -> (i32, i32) {
    %c0_i32 = arith.constant 0 : i32
    %c0_i32_0 = arith.constant 0 : i32
    return %arg0, %c0_i32 : i32, i32
  }
}

</mosaic_0001>

<bundles_post_ra>
// kernel: _identity_copy.1
= control target key start
LH: loop header
LB: loop body
LE: loop exit
PB: predicated region body
PF: predicated region fallthrough
CT: control target
= control target key end

     0   :  { %s38_s0 = inlined_call_operand.vmem [shape: f32[2,1024], index: 0, kind: input, shape index: {}]   ;;  %s39_s1 = inlined_call_operand.vmem [shape: f32[2,1024], index: 1, kind: output, shape index: {}]  }
   0x1   :  { %v8_v0 = vld [vmem:[%s38_s0] sm:$0xff]  ;;  %v9_v1 = vld [vmem:[%s38_s0 + $0x8] sm:$0xff] }
   0x2   :  { %10 = vst [vmem:[%s39_s1] sm:$0xff] %v8_v0 }
   0x3   :  { %11 = vst [vmem:[%s39_s1 + $0x8] sm:$0xff] %v9_v1 }

</bundles_post_ra>
